<compile_context>
chip_gen: v7x
topology: tpu7x:2x2x1
jax: 0.10.0
libtpu: 0.0.40
codegen_flags: <defaults>
</compile_context>

<pallas_src>
import jax
import jax.numpy as jnp
from jax.experimental import pallas as pl
from jax.experimental.pallas import tpu as pltpu

NUM_FEATURES1 = 8
NUM_FEATURES2 = 3
NUM_TOTAL = NUM_FEATURES1 + NUM_FEATURES2

# Flat param vector layout: [w1 (8), b1 (1), w2 (11), b2 (1)] -> 21 scalars.
IDX_W1 = 0
IDX_B1 = NUM_FEATURES1            # 8
IDX_W2 = NUM_FEATURES1 + 1        # 9
IDX_B2 = IDX_W2 + NUM_TOTAL       # 20
NUM_PARAMS = IDX_B2 + 1           # 21


def _model_kernel(params_ref, x_ref, o_ref):
    """params_ref: (21,) f32 in SMEM.
    x_ref: (11, block_B) f32 in VMEM  (rows 0..7 = x1 features, 8..10 = x2).
    o_ref: (2, block_B) f32 in VMEM   (row 0 = out1, row 1 = out2)."""
    blk = o_ref.shape[1]
    acc1 = jnp.zeros((1, blk), jnp.float32)
    acc2 = jnp.zeros((1, blk), jnp.float32)

    # x1 feature rows feed both heads: one row load, two VPU broadcast-MACs.
    for f in range(NUM_FEATURES1):
        row = x_ref[f:f + 1, :]                       # (1, block_B)
        acc1 = acc1 + params_ref[IDX_W1 + f] * row
        acc2 = acc2 + params_ref[IDX_W2 + f] * row

    # x2-only feature rows for head 2.
    for f in range(NUM_FEATURES1, NUM_TOTAL):
        acc2 = acc2 + params_ref[IDX_W2 + f] * x_ref[f:f + 1, :]

    o_ref[0:1, :] = jax.nn.sigmoid(acc1 + params_ref[IDX_B1])
    o_ref[1:2, :] = jax.nn.sigmoid(acc2 + params_ref[IDX_B2])


def model_forward(x1, x2, w1, b1, w2, b2, *, block_b=4096):
    """x1: (B, 8), x2: (B, 3).
    w1: (1, 8), b1: (1,)  — PyTorch nn.Linear(8, 1) layout
    w2: (1, 11), b2: (1,) — PyTorch nn.Linear(11, 1) layout
    Returns (out1, out2), each (B, 1), float32."""
    f32 = jnp.float32
    B = x1.shape[0]
    x1 = jnp.asarray(x1, f32)
    x2 = jnp.asarray(x2, f32)

    # Flat parameter vector for SMEM.
    params = jnp.concatenate([
        jnp.asarray(w1, f32).reshape(-1),   # 8
        jnp.asarray(b1, f32).reshape(-1),   # 1
        jnp.asarray(w2, f32).reshape(-1),   # 11
        jnp.asarray(b2, f32).reshape(-1),   # 1
    ])                                      # (21,)

    # Lane-dense packed input: features on sublanes, batch on lanes.
    x = jnp.concatenate([x1, x2], axis=1).T            # (11, B)

    # Batch block size: multiple of 128, capped at 4096 (safe for v7x's
    # smaller VMEM with double-buffering; >=128 keeps lanes unmasked).
    b_pad128 = max(128, -(-B // 128) * 128)
    bb = min(block_b, b_pad128)
    b_pad = -(-B // bb) * bb
    if b_pad != B:
        x = jnp.pad(x, ((0, 0), (0, b_pad - B)))

    grid = (b_pad // bb,)
    out = pl.pallas_call(
        _model_kernel,
        out_shape=jax.ShapeDtypeStruct((2, b_pad), f32),
        grid=grid,
        in_specs=[
            # 21 scalars, resident in SMEM (not re-DMA'd per block).
            pl.BlockSpec(memory_space=pltpu.MemorySpace.SMEM),
            pl.BlockSpec((NUM_TOTAL, bb), lambda i: (0, i)),
        ],
        out_specs=pl.BlockSpec((2, bb), lambda i: (0, i)),
        compiler_params=pltpu.CompilerParams(
            dimension_semantics=("parallel",)),
    )(params, x)

    out1 = out[0, :B].reshape(B, 1)
    out2 = out[1, :B].reshape(B, 1)
    return out1, out2


def init_params(key):
    """Deterministic init mimicking nn.Linear default (uniform ±1/sqrt(fan_in))."""
    k1, k2, k3, k4 = jax.random.split(key, 4)
    bound1 = 1.0 / jnp.sqrt(jnp.float32(NUM_FEATURES1))
    bound2 = 1.0 / jnp.sqrt(jnp.float32(NUM_TOTAL))
    w1 = jax.random.uniform(k1, (1, NUM_FEATURES1), jnp.float32, -bound1, bound1)
    b1 = jax.random.uniform(k2, (1,), jnp.float32, -bound1, bound1)
    w2 = jax.random.uniform(k3, (1, NUM_TOTAL), jnp.float32, -bound2, bound2)
    b2 = jax.random.uniform(k4, (1,), jnp.float32, -bound2, bound2)
    return w1, b1, w2, b2


if __name__ == "__main__":
    key = jax.random.PRNGKey(0)
    kx1, kx2, kp = jax.random.split(key, 3)

    B = 4
    x1 = jax.random.normal(kx1, (B, NUM_FEATURES1), jnp.float32)
    x2 = jax.random.normal(kx2, (B, NUM_FEATURES2), jnp.float32)
    w1, b1, w2, b2 = init_params(kp)

    out1, out2 = model_forward(x1, x2, w1, b1, w2, b2)
    jax.block_until_ready((out1, out2))

    # Reference check in plain JAX (same math as the PyTorch forward).
    ref1 = jax.nn.sigmoid(x1 @ w1.T + b1)
    ref2 = jax.nn.sigmoid(jnp.concatenate([x1, x2], axis=1) @ w2.T + b2)
    assert out1.shape == (B, 1) and out2.shape == (B, 1)
    assert jnp.allclose(out1, ref1, atol=1e-5)
    assert jnp.allclose(out2, ref2, atol=1e-5)

    print("KERNEL_OK")
</pallas_src>

<mosaic_0001>
module attributes {stable_mosaic.version = 11 : i64} {
  func.func @_model_kernel(%arg0: i32, %arg1: memref<21xf32, #tpu.memory_space<smem>>, %arg2: memref<11x128xf32, #tpu.memory_space<vmem>>, %arg3: memref<2x128xf32, #tpu.memory_space<vmem>>) attributes {dimension_semantics = [#tpu.dimension_semantics<parallel>], iteration_bounds = array<i64: 1>, scalar_prefetch = 0 : i64, scratch_operands = 0 : i64, tpu.core_type = #tpu.core_type<tc>, window_params = [{transform_indices = @transform_0, window_bounds = array<i64: 21>}, {transform_indices = @transform_1, window_bounds = array<i64: 11, 128>}, {transform_indices = @transform_2, window_bounds = array<i64: 2, 128>}]} {
    %cst = arith.constant 0.000000e+00 : f32
    %0 = vector.broadcast %cst : f32 to vector<1x128xf32>
    %cst_0 = arith.constant 0.000000e+00 : f32
    %1 = vector.broadcast %cst_0 : f32 to vector<1x128xf32>
    %c0 = arith.constant 0 : index
    %c0_1 = arith.constant 0 : index
    %2 = vector.load %arg2[%c0, %c0_1] : memref<11x128xf32, #tpu.memory_space<vmem>>, vector<1x128xf32>
    %c0_2 = arith.constant 0 : index
    %3 = memref.load %arg1[%c0_2] : memref<21xf32, #tpu.memory_space<smem>>
    %4 = vector.broadcast %3 : f32 to vector<1x128xf32>
    %5 = arith.mulf %4, %2 : vector<1x128xf32>
    %6 = arith.addf %0, %5 : vector<1x128xf32>
    %c9 = arith.constant 9 : index
    %7 = memref.load %arg1[%c9] : memref<21xf32, #tpu.memory_space<smem>>
    %8 = vector.broadcast %7 : f32 to vector<1x128xf32>
    %9 = arith.mulf %8, %2 : vector<1x128xf32>
    %10 = arith.addf %1, %9 : vector<1x128xf32>
    %c1 = arith.constant 1 : index
    %c0_3 = arith.constant 0 : index
    %11 = vector.load %arg2[%c1, %c0_3] : memref<11x128xf32, #tpu.memory_space<vmem>>, vector<1x128xf32>
    %c1_4 = arith.constant 1 : index
    %12 = memref.load %arg1[%c1_4] : memref<21xf32, #tpu.memory_space<smem>>
    %13 = vector.broadcast %12 : f32 to vector<1x128xf32>
    %14 = arith.mulf %13, %11 : vector<1x128xf32>
    %15 = arith.addf %6, %14 : vector<1x128xf32>
    %c10 = arith.constant 10 : index
    %16 = memref.load %arg1[%c10] : memref<21xf32, #tpu.memory_space<smem>>
    %17 = vector.broadcast %16 : f32 to vector<1x128xf32>
    %18 = arith.mulf %17, %11 : vector<1x128xf32>
    %19 = arith.addf %10, %18 : vector<1x128xf32>
    %c2 = arith.constant 2 : index
    %c0_5 = arith.constant 0 : index
    %20 = vector.load %arg2[%c2, %c0_5] : memref<11x128xf32, #tpu.memory_space<vmem>>, vector<1x128xf32>
    %c2_6 = arith.constant 2 : index
    %21 = memref.load %arg1[%c2_6] : memref<21xf32, #tpu.memory_space<smem>>
    %22 = vector.broadcast %21 : f32 to vector<1x128xf32>
    %23 = arith.mulf %22, %20 : vector<1x128xf32>
    %24 = arith.addf %15, %23 : vector<1x128xf32>
    %c11 = arith.constant 11 : index
    %25 = memref.load %arg1[%c11] : memref<21xf32, #tpu.memory_space<smem>>
    %26 = vector.broadcast %25 : f32 to vector<1x128xf32>
    %27 = arith.mulf %26, %20 : vector<1x128xf32>
    %28 = arith.addf %19, %27 : vector<1x128xf32>
    %c3 = arith.constant 3 : index
    %c0_7 = arith.constant 0 : index
    %29 = vector.load %arg2[%c3, %c0_7] : memref<11x128xf32, #tpu.memory_space<vmem>>, vector<1x128xf32>
    %c3_8 = arith.constant 3 : index
    %30 = memref.load %arg1[%c3_8] : memref<21xf32, #tpu.memory_space<smem>>
    %31 = vector.broadcast %30 : f32 to vector<1x128xf32>
    %32 = arith.mulf %31, %29 : vector<1x128xf32>
    %33 = arith.addf %24, %32 : vector<1x128xf32>
    %c12 = arith.constant 12 : index
    %34 = memref.load %arg1[%c12] : memref<21xf32, #tpu.memory_space<smem>>
    %35 = vector.broadcast %34 : f32 to vector<1x128xf32>
    %36 = arith.mulf %35, %29 : vector<1x128xf32>
    %37 = arith.addf %28, %36 : vector<1x128xf32>
    %c4 = arith.constant 4 : index
    %c0_9 = arith.constant 0 : index
    %38 = vector.load %arg2[%c4, %c0_9] : memref<11x128xf32, #tpu.memory_space<vmem>>, vector<1x128xf32>
    %c4_10 = arith.constant 4 : index
    %39 = memref.load %arg1[%c4_10] : memref<21xf32, #tpu.memory_space<smem>>
    %40 = vector.broadcast %39 : f32 to vector<1x128xf32>
    %41 = arith.mulf %40, %38 : vector<1x128xf32>
    %42 = arith.addf %33, %41 : vector<1x128xf32>
    %c13 = arith.constant 13 : index
    %43 = memref.load %arg1[%c13] : memref<21xf32, #tpu.memory_space<smem>>
    %44 = vector.broadcast %43 : f32 to vector<1x128xf32>
    %45 = arith.mulf %44, %38 : vector<1x128xf32>
    %46 = arith.addf %37, %45 : vector<1x128xf32>
    %c5 = arith.constant 5 : index
    %c0_11 = arith.constant 0 : index
    %47 = vector.load %arg2[%c5, %c0_11] : memref<11x128xf32, #tpu.memory_space<vmem>>, vector<1x128xf32>
    %c5_12 = arith.constant 5 : index
    %48 = memref.load %arg1[%c5_12] : memref<21xf32, #tpu.memory_space<smem>>
    %49 = vector.broadcast %48 : f32 to vector<1x128xf32>
    %50 = arith.mulf %49, %47 : vector<1x128xf32>
    %51 = arith.addf %42, %50 : vector<1x128xf32>
    %c14 = arith.constant 14 : index
    %52 = memref.load %arg1[%c14] : memref<21xf32, #tpu.memory_space<smem>>
    %53 = vector.broadcast %52 : f32 to vector<1x128xf32>
    %54 = arith.mulf %53, %47 : vector<1x128xf32>
    %55 = arith.addf %46, %54 : vector<1x128xf32>
    %c6 = arith.constant 6 : index
    %c0_13 = arith.constant 0 : index
    %56 = vector.load %arg2[%c6, %c0_13] : memref<11x128xf32, #tpu.memory_space<vmem>>, vector<1x128xf32>
    %c6_14 = arith.constant 6 : index
    %57 = memref.load %arg1[%c6_14] : memref<21xf32, #tpu.memory_space<smem>>
    %58 = vector.broadcast %57 : f32 to vector<1x128xf32>
    %59 = arith.mulf %58, %56 : vector<1x128xf32>
    %60 = arith.addf %51, %59 : vector<1x128xf32>
    %c15 = arith.constant 15 : index
    %61 = memref.load %arg1[%c15] : memref<21xf32, #tpu.memory_space<smem>>
    %62 = vector.broadcast %61 : f32 to vector<1x128xf32>
    %63 = arith.mulf %62, %56 : vector<1x128xf32>
    %64 = arith.addf %55, %63 : vector<1x128xf32>
    %c7 = arith.constant 7 : index
    %c0_15 = arith.constant 0 : index
    %65 = vector.load %arg2[%c7, %c0_15] : memref<11x128xf32, #tpu.memory_space<vmem>>, vector<1x128xf32>
    %c7_16 = arith.constant 7 : index
    %66 = memref.load %arg1[%c7_16] : memref<21xf32, #tpu.memory_space<smem>>
    %67 = vector.broadcast %66 : f32 to vector<1x128xf32>
    %68 = arith.mulf %67, %65 : vector<1x128xf32>
    %69 = arith.addf %60, %68 : vector<1x128xf32>
    %c16 = arith.constant 16 : index
    %70 = memref.load %arg1[%c16] : memref<21xf32, #tpu.memory_space<smem>>
    %71 = vector.broadcast %70 : f32 to vector<1x128xf32>
    %72 = arith.mulf %71, %65 : vector<1x128xf32>
    %73 = arith.addf %64, %72 : vector<1x128xf32>
    %c17 = arith.constant 17 : index
    %74 = memref.load %arg1[%c17] : memref<21xf32, #tpu.memory_space<smem>>
    %c8 = arith.constant 8 : index
    %c0_17 = arith.constant 0 : index
    %75 = vector.load %arg2[%c8, %c0_17] : memref<11x128xf32, #tpu.memory_space<vmem>>, vector<1x128xf32>
    %76 = vector.broadcast %74 : f32 to vector<1x128xf32>
    %77 = arith.mulf %76, %75 : vector<1x128xf32>
    %78 = arith.addf %73, %77 : vector<1x128xf32>
    %c18 = arith.constant 18 : index
    %79 = memref.load %arg1[%c18] : memref<21xf32, #tpu.memory_space<smem>>
    %c9_18 = arith.constant 9 : index
    %c0_19 = arith.constant 0 : index
    %80 = vector.load %arg2[%c9_18, %c0_19] : memref<11x128xf32, #tpu.memory_space<vmem>>, vector<1x128xf32>
    %81 = vector.broadcast %79 : f32 to vector<1x128xf32>
    %82 = arith.mulf %81, %80 : vector<1x128xf32>
    %83 = arith.addf %78, %82 : vector<1x128xf32>
    %c19 = arith.constant 19 : index
    %84 = memref.load %arg1[%c19] : memref<21xf32, #tpu.memory_space<smem>>
    %c10_20 = arith.constant 10 : index
    %c0_21 = arith.constant 0 : index
    %85 = vector.load %arg2[%c10_20, %c0_21] : memref<11x128xf32, #tpu.memory_space<vmem>>, vector<1x128xf32>
    %86 = vector.broadcast %84 : f32 to vector<1x128xf32>
    %87 = arith.mulf %86, %85 : vector<1x128xf32>
    %88 = arith.addf %83, %87 : vector<1x128xf32>
    %c8_22 = arith.constant 8 : index
    %89 = memref.load %arg1[%c8_22] : memref<21xf32, #tpu.memory_space<smem>>
    %90 = vector.broadcast %89 : f32 to vector<1x128xf32>
    %91 = arith.addf %69, %90 : vector<1x128xf32>
    %92 = arith.negf %91 : vector<1x128xf32>
    %93 = math.exp %92 : vector<1x128xf32>
    %cst_23 = arith.constant 1.000000e+00 : f32
    %94 = vector.broadcast %cst_23 : f32 to vector<1x128xf32>
    %95 = arith.addf %94, %93 : vector<1x128xf32>
    %96 = arith.divf %94, %95 : vector<1x128xf32>
    %c0_24 = arith.constant 0 : index
    %c0_25 = arith.constant 0 : index
    %97 = vector.load %arg3[%c0_24, %c0_25] : memref<2x128xf32, #tpu.memory_space<vmem>>, vector<1x128xf32>
    tpu.vector_store %arg3[%c0_24, %c0_25], %96 {strides = array<i32>} : memref<2x128xf32, #tpu.memory_space<vmem>>, vector<1x128xf32>,
    %c20 = arith.constant 20 : index
    %98 = memref.load %arg1[%c20] : memref<21xf32, #tpu.memory_space<smem>>
    %99 = vector.broadcast %98 : f32 to vector<1x128xf32>
    %100 = arith.addf %88, %99 : vector<1x128xf32>
    %101 = arith.negf %100 : vector<1x128xf32>
    %102 = math.exp %101 : vector<1x128xf32>
    %cst_26 = arith.constant 1.000000e+00 : f32
    %103 = vector.broadcast %cst_26 : f32 to vector<1x128xf32>
    %104 = arith.addf %103, %102 : vector<1x128xf32>
    %105 = arith.divf %103, %104 : vector<1x128xf32>
    %c1_27 = arith.constant 1 : index
    %c0_28 = arith.constant 0 : index
    %106 = vector.load %arg3[%c1_27, %c0_28] : memref<2x128xf32, #tpu.memory_space<vmem>>, vector<1x128xf32>
    tpu.vector_store %arg3[%c1_27, %c0_28], %105 {strides = array<i32>} : memref<2x128xf32, #tpu.memory_space<vmem>>, vector<1x128xf32>,
    return
  }
  func.func @transform_0(%arg0: i32) -> i32 {
    %c0_i32 = arith.constant 0 : i32
    %c0_i32_0 = arith.constant 0 : i32
    return %c0_i32 : i32
  }
  func.func @transform_1(%arg0: i32) -> (i32, i32) {
    %c0_i32 = arith.constant 0 : i32
    %c0_i32_0 = arith.constant 0 : i32
    return %c0_i32, %arg0 : i32, i32
  }
  func.func @transform_2(%arg0: i32) -> (i32, i32) {
    %c0_i32 = arith.constant 0 : i32
    %c0_i32_0 = arith.constant 0 : i32
    return %c0_i32, %arg0 : i32, i32
  }
}

</mosaic_0001>

<bundles_post_ra>
// kernel: tpu_custom_call.1
= control target key start
LH: loop header
LB: loop body
LE: loop exit
PB: predicated region body
PF: predicated region fallthrough
CT: control target
= control target key end

     0   :  { %7 = vsyncpa [#allocation5], 0  ;;  %s350_s0 = inlined_call_operand.hbm [shape: f32[21], index: 0, kind: input, shape index: {}]   ;;  %s351_s1 = inlined_call_operand.hbm [shape: f32[11,128], index: 1, kind: input, shape index: {}]   ;;  %s352_s2 = inlined_call_operand.hbm [shape: f32[2,128], index: 2, kind: output, shape index: {}]  }
   0x1   :  { %8 = vsyncpa [#allocation3], 0 }
   0x2   :  { %9 = vsyncpa [#allocation4], 0  ;;  %s195_s11 = scalar_lea.hbm %s350_s0, 16 }
   0x3   :  { %p196_p0 = scmp.ne.s32.totalorder %s350_s0, %s195_s11  ;;  %p199_p1 = scmp.lt.u32.totalorder %s195_s11, %s350_s0 }
   0x5   :  { %p201_p2 = pnand %p199_p1, %p196_p0 }
   0x7   :  { %204 = shalt.err (!%p201_p2)
}
   0x8   :  { %s255_s16 = smov [#allocation2]   ;;  %s256_s19 = smov [#allocation6]  }
   0x9   :  { %17 = dma.hbm_to_smem %s350_s0, 16, %s255_s16, [#allocation5]  }
   0xa   :  { %s23_s20 = sshll.u32 %s256_s19, 4  ;;  %s205_s23 = scalar_lea.hbm %s351_s1, 256  ;;  %s24_s20 = int_to_ptr.vmem [resolvable:$true] %s23_s20 }
   0xb   :  { %p206_p3 = scmp.ne.s32.totalorder %s351_s1, %s205_s23  ;;  %p209_p4 = scmp.lt.u32.totalorder %s205_s23, %s351_s1 }
   0xd   :  { %p211_p5 = pnand %p209_p4, %p206_p3 }
   0xf   :  { %214 = shalt.err (!%p211_p5)
}
  0x10   :  { %s215_s28 = scalar_lea.vmem %s24_s20, 256  ;;  %p220_p7 = scmp.lt.s32.totalorder %s24_s20, %s24_s20 }
  0x11   :  { %p216_p6 = scmp.ne.s32.totalorder %s24_s20, %s215_s28  ;;  %p221_p8 = scmp.lt.s32.totalorder %s215_s28, %s215_s28 }
  0x13   :  { %p222_p9 = por %p221_p8, %p220_p7 }
  0x15   :  { %p223_p10 = pnand %p222_p9, %p216_p6 }
  0x17   :  { %226 = shalt.err (!%p223_p10)
}
  0x18   :  { %s257_s0 = smov 128   ;;  %s258_s29 = smov 8  }
  0x19   :  { %29 = dma.hbm_to_vmem [thread:$0]  %s351_s1, 256, %s24_s20, [#allocation3], %s257_s0, %s257_s0, %s258_s29  }
  0x1a   :  { %249 = dma.done.wait [#allocation5], 16  }
  0x1b   :  { %250 = vsyncadd [#allocation5], 4294967280 }
  0x1c   :  { %251 = dma.done.wait [#allocation3], 256  }
  0x1d   :  { %252 = vsyncadd [#allocation3], 4294967040 }
  0x1e   :  { %36 = sfence }
  0x1f   :  { %s38_s4 = sld [smem:[#allocation2]]  ;;  %s299_s5 = sld [smem:[#allocation2 + $0x9]]  ;;  %v37_v0 = vld [vmem:[#allocation6] sm:$0x1]  ;;  %v46_v3 = vld [vmem:[#allocation6 + $0x1] sm:$0x1] }
  0x20   :  { %s161_s6 = sld [smem:[#allocation2 + $0x1]]  ;;  %s162_s7 = sld [smem:[#allocation2 + $0xa]]  ;;  %v55_v8 = vld [vmem:[#allocation6 + $0x2] sm:$0x1]  ;;  %v64_v11 = vld [vmem:[#allocation6 + $0x3] sm:$0x1] }
  0x21   :  { %s163_s8 = sld [smem:[#allocation2 + $0x2]]  ;;  %s301_s9 = sld [smem:[#allocation2 + $0xb]]  ;;  %v73_v19 = vld [vmem:[#allocation6 + $0x4] sm:$0x1]  ;;  %v82_v25 = vld [vmem:[#allocation6 + $0x5] sm:$0x1] }
  0x22   :  { %s165_s10 = sld [smem:[#allocation2 + $0x3]]  ;;  %s303_s11 = sld [smem:[#allocation2 + $0xc]]  ;;  %v91_v31 = vld [vmem:[#allocation6 + $0x6] sm:$0x1]  ;;  %v100_v38 = vld [vmem:[#allocation6 + $0x7] sm:$0x1] }
  0x23   :  { %s305_s12 = sld [smem:[#allocation2 + $0x4]]  ;;  %s307_s1 = sld [smem:[#allocation2 + $0x5]]  ;;  %v110_v51 = vld [vmem:[#allocation6 + $0x8] sm:$0x1]  ;;  %v115_v56 = vld [vmem:[#allocation6 + $0x9] sm:$0x1] }
  0x24   :  { %s309_s13 = sld [smem:[#allocation2 + $0xd]]  ;;  %s311_s14 = sld [smem:[#allocation2 + $0x6]]  ;;  %v120_v61 = vld [vmem:[#allocation6 + $0xa] sm:$0x1] }
  0x25   :  { %v39_v1 = vstv %s38_s4  ;;  %s313_s15 = sld [smem:[#allocation2 + $0x7]]  ;;  %v43_v5 = vstv %s299_s5  ;;  %s316_s16 = sld [smem:[#allocation2 + $0xe]] }
  0x26   :  { %v40_v2 = vmul.f32 %v39_v1, %v37_v0  ;;  %v48_v4 = vstv %s161_s6  ;;  %v52_v7 = vstv %s162_s7  ;;  %s320_s17 = sld [smem:[#allocation2 + $0xf]]  ;;  %v44_v17 = vmul.f32 %v43_v5, %v37_v0  ;;  %s324_s18 = sld [smem:[#allocation2 + $0x10]] }
  0x27   :  { %v49_v6 = vmul.f32 %v48_v4, %v46_v3  ;;  %v57_v9 = vstv %s163_s8  ;;  %v61_v14 = vstv %s301_s9  ;;  %v53_v18 = vmul.f32 %v52_v7, %v46_v3  ;;  %s327_s19 = sld [smem:[#allocation2 + $0x8]]  ;;  %s330_s20 = sld [smem:[#allocation2 + $0x11]] }
  0x28   :  { %v58_v10 = vmul.f32 %v57_v9, %v55_v8  ;;  %v66_v12 = vstv %s165_s10  ;;  %v70_v22 = vstv %s303_s11  ;;  %v62_v24 = vmul.f32 %v61_v14, %v55_v8  ;;  %s176_s21 = sld [smem:[#allocation2 + $0x12]]  ;;  %s177_s22 = sld [smem:[#allocation2 + $0x13]] }
  0x29   :  { %v50_v13 = vadd.f32 %v49_v6, %v40_v2  ;;  %v67_v15 = vmul.f32 %v66_v12, %v64_v11  ;;  %v75_v16 = vstv %s305_s12  ;;  %v84_v20 = vstv %s307_s1  ;;  %s180_s23 = sld [smem:[#allocation2 + $0x14]]  ;;  %s259_s24 = smov [#allocation7]  }
  0x2a   :  { %v76_v23 = vmul.f32 %v75_v16, %v73_v19  ;;  %v93_v26 = vstv %s311_s14  ;;  %v79_v28 = vstv %s309_s13  ;;  %v85_v29 = vmul.f32 %v84_v20, %v82_v25  ;;  %s150_s25 = sshll.u32 %s259_s24, 4  ;;  %s151_s25 = int_to_ptr.vmem [resolvable:$true] %s150_s25 }
  0x2b   :  { %v59_v21 = vadd.f32 %v58_v10, %v50_v13  ;;  %v71_v30 = vmul.f32 %v70_v22, %v64_v11  ;;  %v102_v32 = vstv %s313_s15  ;;  %v54_v33 = vadd.f32 %v53_v18, %v44_v17  ;;  %s227_s26 = scalar_lea.vmem %s151_s25, 32  ;;  %p232_p12 = scmp.lt.s32.totalorder %s151_s25, %s151_s25 }
  0x2c   :  { %v88_v35 = vstv %s316_s16  ;;  %v94_v36 = vmul.f32 %v93_v26, %v91_v31  ;;  %v80_v37 = vmul.f32 %v79_v28, %v73_v19  ;;  %v97_v41 = vstv %s320_s17  ;;  %p228_p11 = scmp.ne.s32.totalorder %s151_s25, %s227_s26  ;;  %p233_p13 = scmp.lt.s32.totalorder %s227_s26, %s227_s26 }
  0x2d   :  { %v68_v27 = vadd.f32 %v67_v15, %v59_v21  ;;  %v63_v39 = vadd.f32 %v62_v24, %v54_v33  ;;  %v103_v42 = vmul.f32 %v102_v32, %v100_v38  ;;  %v89_v43 = vmul.f32 %v88_v35, %v82_v25 }
  0x2e   :  { %v106_v46 = vstv %s324_s18  ;;  %v98_v47 = vmul.f32 %v97_v41, %v91_v31  ;;  %v125_v48 = vstv %s327_s19  ;;  %v111_v52 = vstv %s330_s20  ;;  %p234_p0 = por %p233_p13, %p232_p12 }
  0x2f   :  { %v77_v34 = vadd.f32 %v76_v23, %v68_v27  ;;  %v72_v44 = vadd.f32 %v71_v30, %v63_v39  ;;  %v107_v53 = vmul.f32 %v106_v46, %v100_v38  ;;  %v116_v57 = vstv %s176_s21 }
  0x30   :  { %v112_v59 = vmul.f32 %v111_v52, %v110_v51  ;;  %v121_v62 = vstv %s177_s22  ;;  %v117_v0 = vmul.f32 %v116_v57, %v115_v56  ;;  %v135_v4 = vstv %s180_s23  ;;  %p235_p1 = pnand %p234_p0, %p228_p11 }
  0x31   :  { %v86_v40 = vadd.f32 %v85_v29, %v77_v34  ;;  %v81_v49 = vadd.f32 %v80_v37, %v72_v44  ;;  %v122_v2 = vmul.f32 %v121_v62, %v120_v61 }
  0x33   :  { %v95_v45 = vadd.f32 %v94_v36, %v86_v40  ;;  %v90_v54 = vadd.f32 %v89_v43, %v81_v49 }
  0x35   :  { %v104_v50 = vadd.f32 %v103_v42, %v95_v45  ;;  %v99_v58 = vadd.f32 %v98_v47, %v90_v54 }
  0x37   :  { %v126_v55 = vadd.f32 %v125_v48, %v104_v50  ;;  %v108_v63 = vadd.f32 %v107_v53, %v99_v58 }
  0x39   :  { %v179_v60 = vmul.f32 -1.442695, %v126_v55  ;;  %v113_v1 = vadd.f32 %v112_v59, %v108_v63 }
  0x3b   :  { %187 = vpow2.f32 %v179_v60  ;;  %v118_v3 = vadd.f32 %v117_v0, %v113_v1 }
  0x3d   :  { %v123_v5 = vadd.f32 %v122_v2, %v118_v3 }
  0x3f   :  { %v136_v6 = vadd.f32 %v135_v4, %v123_v5 }
  0x41   :  { %v181_v7 = vmul.f32 -1.442695, %v136_v6 }
  0x43   :  { %189 = vpow2.f32 %v181_v7 }
  0x45   :  { %v188_v8 = vpop.eup %187 }
  0x46   :  { %v130_v9 = vadd.f32 1.0, %v188_v8 }
  0x48   :  { %191 = vrcp.f32 %v130_v9 }
  0x4d   :  { %v190_v10 = vpop.eup %189 }
  0x4e   :  { %v140_v11 = vadd.f32 1.0, %v190_v10 }
  0x50   :  { %193 = vrcp.f32 %v140_v11 }
  0x52   :  { %v192_v12 = vpop.eup %191 }
  0x53   :  { %133 = vst [vmem:[#allocation7] sm:$0x1] %v192_v12 }
  0x5a   :  { %v194_v13 = vpop.eup %193 }
  0x5b   :  { %143 = vst [vmem:[#allocation7 + $0x1] sm:$0x1] %v194_v13 }
  0x5c   :  { %238 = shalt.err (!%p235_p1)
}
  0x5d   :  { %s239_s0 = scalar_lea.hbm %s352_s2, 32 }
  0x5e   :  { %p240_p2 = scmp.ne.s32.totalorder %s352_s2, %s239_s0  ;;  %p243_p3 = scmp.lt.u32.totalorder %s239_s0, %s352_s2 }
  0x60   :  { %p245_p4 = pnand %p243_p3, %p240_p2 }
  0x62   :  { %248 = shalt.err (!%p245_p4)
}
  0x63   :  { %153 = dma.vmem_to_hbm [thread:$0]  %s151_s25, 32, %s352_s2, [#allocation4]  }
  0x64   :  { %253 = dma.done.wait [#allocation4], 32  }
  0x65   :  { %254 = vsyncadd [#allocation4], 4294967264 }
  0x66   :  { %157 = vsyncpa [#allocation3], 1 }
  0x67   :  { %158 = vsyncpa [#allocation4], 1 }
  0x68   :  { %159 = vsyncpa [#allocation5], 1 }

</bundles_post_ra>
